<compile_context>
chip_gen: v7x
topology: tpu7x:2x2x1
jax: 0.10.0
libtpu: 0.0.40
codegen_flags: <defaults>
</compile_context>

<pallas_src>
import functools

import jax
import jax.numpy as jnp
from jax.experimental import pallas as pl
from jax.experimental.pallas import tpu as pltpu


def _round_up(x, m):
    return ((x + m - 1) // m) * m


def _vmem_limit_bytes():
    """Per-generation scoped-VMEM limit with headroom (v7x has only 64 MiB per TC)."""
    try:
        cap = int(getattr(pltpu.get_tpu_info(), "vmem_capacity_bytes", 0) or 0)
    except Exception:
        cap = 0
    if cap <= 0:
        return 48 * 1024 * 1024                     # conservative: fits every generation
    return min(int(cap * 3 // 4), 96 * 1024 * 1024)  # 48 MiB on v7x, 96 MiB on v5e/v6e


_VMEM_LIMIT = _vmem_limit_bytes()

_CPARAMS = pltpu.CompilerParams(
    dimension_semantics=("parallel",),   # row-tile axis -> megacore split on v7x
    vmem_limit_bytes=_VMEM_LIMIT,
)


def _choose_tile(num_nodes, cin, hid, out_pad):
    """Row tile: multiple of 32 (int8 sublane packing), minimal padding, VMEM-aware."""
    budget = int(_VMEM_LIMIT * 0.8)
    best_tm, best_pad = None, None
    for tm in range(32, 513, 32):
        n_pad = _round_up(num_nodes, tm)
        need = (8 * tm * n_pad        # int8 A double-buffer + in-kernel f32/bf16 temps
                + 4 * n_pad * hid     # resident XW / R (bf16, double-buffered)
                + 4 * n_pad * cin     # resident X (bf16, double-buffered)
                + 8 * tm * out_pad    # f32 head-output double buffer
                + 4 * hid * out_pad   # fused head weights
                + (1 << 20))          # misc headroom
        if need > budget:
            continue
        if (best_pad is None or n_pad < best_pad
                or (n_pad == best_pad and tm > best_tm)):
            best_tm, best_pad = tm, n_pad
    if best_tm is None:               # enormous N: smallest tile, best effort
        best_tm = 32
        best_pad = _round_up(num_nodes, 32)
    return best_tm, best_pad


# ---------------- kernel 1: feature transform  XW = (D^-1/2 X) @ W1 ----------------
def _feat_kernel(x_ref, w_ref, xw_ref):
    xw_ref[...] = jnp.dot(x_ref[...], w_ref[...],
                          preferred_element_type=jnp.float32).astype(xw_ref.dtype)


# ------ kernel 2: aggregation  H = D^-1/2 [(A+I) @ XW]  + per-tile BN partial sums ----
def _agg_kernel(a_ref, xw_ref, drow_ref, h_ref, stats_ref):
    # int8 edge counts (exact) -> bf16 for the MXU; f32 step keeps the convert portable.
    a = a_ref[...].astype(jnp.float32).astype(jnp.bfloat16)
    h = jnp.dot(a, xw_ref[...], preferred_element_type=jnp.float32) * drow_ref[...]
    h_ref[...] = h.astype(h_ref.dtype)                       # bf16 writeback
    # single-pass BN partial stats from the f32 accumulator (var = E[h^2] - mean^2 later)
    stats_ref[0, 0:1, :] = jnp.sum(h, axis=0, keepdims=True)
    stats_ref[0, 1:2, :] = jnp.sum(h * h, axis=0, keepdims=True)


# -- kernel 3: fused heads  OUT = D^-1/2 [(A+I) @ R] @ [W_mu|W_logstd] + [b_mu|b_logstd] -
def _head_kernel(a_ref, r_ref, drow_ref, wcat_ref, bcat_ref, o_ref):
    a = a_ref[...].astype(jnp.float32).astype(jnp.bfloat16)
    ar = jnp.dot(a, r_ref[...], preferred_element_type=jnp.float32) * drow_ref[...]
    o_ref[...] = jnp.dot(ar.astype(jnp.bfloat16), wcat_ref[...],
                         preferred_element_type=jnp.float32) + bcat_ref[...]


def _gcn_norm_adj_reference(edge_index, num_nodes):
    """Reference-only dense A_hat = D^-1/2 (A + I) D^-1/2 (PyG gcn_norm)."""
    src, dst = edge_index[0], edge_index[1]
    a = jnp.zeros((num_nodes, num_nodes), jnp.float32).at[dst, src].add(1.0)
    diag = jnp.diagonal(a)
    a = a + jnp.diag(jnp.where(diag > 0.0, 0.0, 1.0))
    deg = jnp.sum(a, axis=1)
    d_inv_sqrt = jnp.where(deg > 0, jax.lax.rsqrt(deg), 0.0)
    return d_inv_sqrt[:, None] * a * d_inv_sqrt[None, :]


@functools.partial(jax.jit, static_argnames=("num_nodes",))
def vgcn_encoder2(x, edge_index, params, *, num_nodes):
    cin = x.shape[1]
    hid = params["w1"].shape[1]
    out = params["w_mu"].shape[1]
    out2 = 2 * out
    out_pad = _round_up(out2, 128)                 # lane-dense fused output width

    tm, n_pad = _choose_tile(num_nodes, cin, hid, out_pad)
    nt = n_pad // tm
    pad = n_pad - num_nodes

    # ---- adjacency as raw 8-bit edge counts, D^-1/2 factored out -------------------
    src, dst = edge_index[0], edge_index[1]
    ones_e = jnp.ones(src.shape, jnp.float32)
    row_cnt = jnp.zeros((num_nodes,), jnp.float32).at[dst].add(ones_e)          # O(E)
    self_cnt = jnp.zeros((num_nodes,), jnp.float32).at[dst].add(
        jnp.where(src == dst, 1.0, 0.0))
    deg = row_cnt + jnp.where(self_cnt > 0.0, 0.0, 1.0)   # add only missing self loops
    d_inv_sqrt = jnp.where(deg > 0.0, jax.lax.rsqrt(deg), 0.0)

    # padded int8 (A+I) counts built directly; dup edges accumulate (int8 is plenty)
    a_cnt = jnp.zeros((n_pad, n_pad), jnp.int8)
    a_cnt = a_cnt.at[dst, src].add(jnp.ones(src.shape, jnp.int8))
    idx = jnp.arange(num_nodes)
    a_cnt = a_cnt.at[idx, idx].add(jnp.where(self_cnt > 0.0, 0, 1).astype(jnp.int8))

    d_inv = jnp.pad(d_inv_sqrt, (0, pad)).reshape(n_pad, 1).astype(jnp.float32)

    # pre-scale X by D^-1/2 in f32 (column scaling of the first aggregation), then bf16
    x_s = jnp.pad(x * d_inv_sqrt[:, None], ((0, pad), (0, 0))).astype(jnp.bfloat16)
    w1_bf = params["w1"].astype(jnp.bfloat16)

    # fused mu/logstd head, zero-padded to out_pad lanes
    wcat = jnp.concatenate([params["w_mu"], params["w_logstd"]], axis=1)   # (hid, 2*out)
    wcat_bf = jnp.pad(wcat, ((0, 0), (0, out_pad - out2))).astype(jnp.bfloat16)
    bcat = jnp.concatenate([params["b_mu"], params["b_logstd"]], axis=0)
    bcat_p = jnp.pad(bcat, (0, out_pad - out2)).reshape(1, out_pad).astype(jnp.float32)

    # ---- stage 1: XW = (D^-1/2 X) @ W1 (row-tiled) ----------------------------------
    xw = pl.pallas_call(
        _feat_kernel,
        out_shape=jax.ShapeDtypeStruct((n_pad, hid), jnp.bfloat16),
        grid=(nt,),
        in_specs=[pl.BlockSpec((tm, cin), lambda i: (i, 0)),
                  pl.BlockSpec((cin, hid), lambda i: (0, 0))],
        out_specs=pl.BlockSpec((tm, hid), lambda i: (i, 0)),
        compiler_params=_CPARAMS,
    )(x_s, w1_bf)

    # ---- stage 2: H = D^-1/2 (A+I) XW  + per-tile BN partial stats ------------------
    # (b1 intentionally omitted: exactly cancelled by train-mode BN mean subtraction)
    h_bf, stats = pl.pallas_call(
        _agg_kernel,
        out_shape=(jax.ShapeDtypeStruct((n_pad, hid), jnp.bfloat16),
                   jax.ShapeDtypeStruct((nt, 2, hid), jnp.float32)),
        grid=(nt,),
        in_specs=[pl.BlockSpec((tm, n_pad), lambda i: (i, 0)),    # int8 counts
                  pl.BlockSpec((n_pad, hid), lambda i: (0, 0)),   # resident XW
                  pl.BlockSpec((tm, 1), lambda i: (i, 0))],       # d^-1/2 rows
        out_specs=(pl.BlockSpec((tm, hid), lambda i: (i, 0)),
                   pl.BlockSpec((1, 2, hid), lambda i: (i, 0, 0))),
        compiler_params=_CPARAMS,
    )(a_cnt, xw, d_inv)

    # ---- finalize BN batch stats; BN + ReLU + next-stage column scaling -------------
    # (one O(N*hid) XLA elementwise pass — computed once, not once per row tile)
    ssum = jnp.sum(stats, axis=0)                                  # (2, hid)
    mean = ssum[0] / num_nodes
    var = jnp.maximum(ssum[1] / num_nodes - mean * mean, 0.0)      # biased, train-mode BN
    inv_std = jax.lax.rsqrt(var + 1e-5)
    scale = params["gamma"] * inv_std
    shift = params["beta"] - mean * scale
    r = jnp.maximum(h_bf.astype(jnp.float32) * scale[None, :] + shift[None, :], 0.0)
    r_bf = (r * d_inv).astype(jnp.bfloat16)      # padded rows hit d_inv == 0 -> zeroed

    # TODO(synk): training-mode dropout would need an RNG mask (pltpu.prng_*);
    # eval-mode dropout is the identity, which is what is implemented here.

    # ---- stage 3: fused mu/logstd heads, single lane-dense output -------------------
    full = pl.pallas_call(
        _head_kernel,
        out_shape=jax.ShapeDtypeStruct((n_pad, out_pad), jnp.float32),
        grid=(nt,),
        in_specs=[pl.BlockSpec((tm, n_pad), lambda i: (i, 0)),     # int8 counts
                  pl.BlockSpec((n_pad, hid), lambda i: (0, 0)),    # resident R
                  pl.BlockSpec((tm, 1), lambda i: (i, 0)),         # d^-1/2 rows
                  pl.BlockSpec((hid, out_pad), lambda i: (0, 0)),
                  pl.BlockSpec((1, out_pad), lambda i: (0, 0))],
        out_specs=pl.BlockSpec((tm, out_pad), lambda i: (i, 0)),
        compiler_params=_CPARAMS,
    )(a_cnt, r_bf, d_inv, wcat_bf, bcat_p)

    mu = full[:num_nodes, :out]
    logstd = full[:num_nodes, out:out2]
    return mu, logstd


def init_params(key, in_channels, out_channels):
    hid = 2 * out_channels
    ks = jax.random.split(key, 6)
    scale1 = 1.0 / jnp.sqrt(jnp.float32(in_channels))
    scale2 = 1.0 / jnp.sqrt(jnp.float32(hid))
    return {
        "w1": (jax.random.normal(ks[0], (in_channels, hid), jnp.float32) * scale1),
        "b1": jnp.zeros((hid,), jnp.float32),        # cancelled by train-mode BN
        "gamma": jnp.ones((hid,), jnp.float32),      # BatchNorm1d default affine
        "beta": jnp.zeros((hid,), jnp.float32),
        "w_mu": (jax.random.normal(ks[1], (hid, out_channels), jnp.float32) * scale2),
        "b_mu": jnp.zeros((out_channels,), jnp.float32),
        "w_logstd": (jax.random.normal(ks[2], (hid, out_channels), jnp.float32) * scale2),
        "b_logstd": jnp.zeros((out_channels,), jnp.float32),
    }


if __name__ == "__main__":
    key = jax.random.PRNGKey(0)
    k_x, k_p = jax.random.split(key)

    num_nodes = 16
    in_channels = 8
    out_channels = 8      # hidden = 2 * out_channels = 16
    dr = 0.5              # dropout prob (identity in eval mode)

    # node features (N, Cin)
    x = jax.random.normal(k_x, (num_nodes, in_channels), jnp.float32)

    # simple undirected ring graph as edge_index (2, 2N)
    idx = jnp.arange(num_nodes, dtype=jnp.int32)
    nxt = (idx + 1) % num_nodes
    edge_index = jnp.stack([
        jnp.concatenate([idx, nxt]),
        jnp.concatenate([nxt, idx]),
    ], axis=0)

    params = init_params(k_p, in_channels, out_channels)

    mu, logstd = vgcn_encoder2(x, edge_index, params, num_nodes=num_nodes)
    jax.block_until_ready((mu, logstd))

    assert mu.shape == (num_nodes, out_channels)
    assert logstd.shape == (num_nodes, out_channels)

    # pure-JAX f32 reference (bf16 MXU operands in the kernel -> loose tolerance)
    a_hat = _gcn_norm_adj_reference(edge_index, num_nodes)
    h = a_hat @ (x @ params["w1"]) + params["b1"]
    mean = jnp.mean(h, axis=0)
    var = jnp.mean((h - mean) ** 2, axis=0)
    h = (h - mean) * jax.lax.rsqrt(var + 1e-5) * params["gamma"] + params["beta"]
    h = jnp.maximum(h, 0.0)
    mu_ref = a_hat @ (h @ params["w_mu"]) + params["b_mu"]
    ls_ref = a_hat @ (h @ params["w_logstd"]) + params["b_logstd"]
    assert jnp.allclose(mu, mu_ref, rtol=5e-2, atol=5e-2)
    assert jnp.allclose(logstd, ls_ref, rtol=5e-2, atol=5e-2)

    print("KERNEL_OK")
</pallas_src>

<mosaic_0001>
module attributes {stable_mosaic.version = 11 : i64} {
  func.func private @main(%arg0: i32) attributes {dimension_semantics = [#tpu.dimension_semantics<core_parallel>], iteration_bounds = array<i64: 2>, tpu.core_type = #tpu.core_type<sc_scalar_subcore>, window_params = []} {
    return
  }
}

module attributes {stable_mosaic.version = 11 : i64} {
  func.func private @main(%arg0: i32) attributes {dimension_semantics = [#tpu.dimension_semantics<core_parallel>], iteration_bounds = array<i64: 2>, tpu.core_type = #tpu.core_type<sc_scalar_subcore>, window_params = []} {
    return
  }
}

module attributes {stable_mosaic.version = 11 : i64} {
  func.func @_feat_kernel(%arg0: i32, %arg1: memref<32x8xbf16, #tpu.memory_space<vmem>>, %arg2: memref<8x16xbf16, #tpu.memory_space<vmem>>, %arg3: memref<32x16xbf16, #tpu.memory_space<vmem>>) attributes {dimension_semantics = [#tpu.dimension_semantics<parallel>], iteration_bounds = array<i64: 1>, scalar_prefetch = 0 : i64, scratch_operands = 0 : i64, tpu.core_type = #tpu.core_type<tc>, window_params = [{transform_indices = @transform_0, window_bounds = array<i64: 32, 8>}, {pipeline_mode = #tpu.pipeline_mode<synchronous>, transform_indices = @transform_1, window_bounds = array<i64: 8, 16>}, {transform_indices = @transform_2, window_bounds = array<i64: 32, 16>}]} {
    %c0 = arith.constant 0 : index
    %c0_0 = arith.constant 0 : index
    %0 = vector.load %arg1[%c0, %c0_0] : memref<32x8xbf16, #tpu.memory_space<vmem>>, vector<32x8xbf16>
    %c0_1 = arith.constant 0 : index
    %c0_2 = arith.constant 0 : index
    %1 = vector.load %arg2[%c0_1, %c0_2] : memref<8x16xbf16, #tpu.memory_space<vmem>>, vector<8x16xbf16>
    %cst = arith.constant dense<0.000000e+00> : vector<32x16xf32>
    %2 = tpu.matmul %0, %1, %cst {dimension_numbers = #tpu.dot_dimension_numbers<[1], [0], [0], [1], [0, 0, 1, 1], [], []>} : vector<32x8xbf16>, vector<8x16xbf16>, vector<32x16xf32> -> vector<32x16xf32>
    %3 = arith.truncf %2 : vector<32x16xf32> to vector<32x16xbf16>
    %c0_3 = arith.constant 0 : index
    %c0_4 = arith.constant 0 : index
    %4 = vector.load %arg3[%c0_3, %c0_4] : memref<32x16xbf16, #tpu.memory_space<vmem>>, vector<32x16xbf16>
    tpu.vector_store %arg3[%c0_3, %c0_4], %3 {strides = array<i32>} : memref<32x16xbf16, #tpu.memory_space<vmem>>, vector<32x16xbf16>,
    return
  }
  func.func @transform_0(%arg0: i32) -> (i32, i32) {
    %c0_i32 = arith.constant 0 : i32
    %c0_i32_0 = arith.constant 0 : i32
    return %arg0, %c0_i32 : i32, i32
  }
  func.func @transform_1(%arg0: i32) -> (i32, i32) {
    %c0_i32 = arith.constant 0 : i32
    %c0_i32_0 = arith.constant 0 : i32
    %c0_i32_1 = arith.constant 0 : i32
    return %c0_i32, %c0_i32_0 : i32, i32
  }
  func.func @transform_2(%arg0: i32) -> (i32, i32) {
    %c0_i32 = arith.constant 0 : i32
    %c0_i32_0 = arith.constant 0 : i32
    return %arg0, %c0_i32 : i32, i32
  }
}

module attributes {stable_mosaic.version = 11 : i64} {
  func.func @_agg_kernel(%arg0: i32, %arg1: memref<32x32xi8, #tpu.memory_space<vmem>>, %arg2: memref<32x16xbf16, #tpu.memory_space<vmem>>, %arg3: memref<32x1xf32, #tpu.memory_space<vmem>>, %arg4: memref<32x16xbf16, #tpu.memory_space<vmem>>, %arg5: memref<1x2x16xf32, #tpu.memory_space<vmem>>) attributes {dimension_semantics = [#tpu.dimension_semantics<parallel>], iteration_bounds = array<i64: 1>, scalar_prefetch = 0 : i64, scratch_operands = 0 : i64, tpu.core_type = #tpu.core_type<tc>, window_params = [{transform_indices = @transform_0, window_bounds = array<i64: 32, 32>}, {pipeline_mode = #tpu.pipeline_mode<synchronous>, transform_indices = @transform_1, window_bounds = array<i64: 32, 16>}, {transform_indices = @transform_2, window_bounds = array<i64: 32, 1>}, {transform_indices = @transform_3, window_bounds = array<i64: 32, 16>}, {transform_indices = @transform_4, window_bounds = array<i64: 1, 2, 16>}]} {
    %c0 = arith.constant 0 : index
    %c0_0 = arith.constant 0 : index
    %0 = vector.load %arg1[%c0, %c0_0] : memref<32x32xi8, #tpu.memory_space<vmem>>, vector<32x32xi8>
    %1 = arith.sitofp %0 : vector<32x32xi8> to vector<32x32xf32>
    %2 = arith.truncf %1 : vector<32x32xf32> to vector<32x32xbf16>
    %c0_1 = arith.constant 0 : index
    %c0_2 = arith.constant 0 : index
    %3 = vector.load %arg2[%c0_1, %c0_2] : memref<32x16xbf16, #tpu.memory_space<vmem>>, vector<32x16xbf16>
    %cst = arith.constant dense<0.000000e+00> : vector<32x16xf32>
    %4 = tpu.matmul %2, %3, %cst {dimension_numbers = #tpu.dot_dimension_numbers<[1], [0], [0], [1], [0, 0, 1, 1], [], []>} : vector<32x32xbf16>, vector<32x16xbf16>, vector<32x16xf32> -> vector<32x16xf32>
    %c0_3 = arith.constant 0 : index
    %c0_4 = arith.constant 0 : index
    %5 = vector.load %arg3[%c0_3, %c0_4] : memref<32x1xf32, #tpu.memory_space<vmem>>, vector<32x1xf32>
    %6 = vector.broadcast %5 : vector<32x1xf32> to vector<32x16xf32>
    %7 = arith.mulf %4, %6 : vector<32x16xf32>
    %8 = arith.truncf %7 : vector<32x16xf32> to vector<32x16xbf16>
    %c0_5 = arith.constant 0 : index
    %c0_6 = arith.constant 0 : index
    %9 = vector.load %arg4[%c0_5, %c0_6] : memref<32x16xbf16, #tpu.memory_space<vmem>>, vector<32x16xbf16>
    tpu.vector_store %arg4[%c0_5, %c0_6], %8 {strides = array<i32>} : memref<32x16xbf16, #tpu.memory_space<vmem>>, vector<32x16xbf16>,
    %cst_7 = arith.constant dense<0.000000e+00> : vector<16xf32>
    %10 = vector.multi_reduction <add>, %7, %cst_7 [0] : vector<32x16xf32> to vector<16xf32>
    %11 = vector.shape_cast %10 : vector<16xf32> to vector<1x16xf32>
    %c0_8 = arith.constant 0 : index
    %c0_9 = arith.constant 0 : index
    %c0_10 = arith.constant 0 : index
    %12 = vector.load %arg5[%c0_8, %c0_9, %c0_10] : memref<1x2x16xf32, #tpu.memory_space<vmem>>, vector<1x1x16xf32>
    %13 = vector.shape_cast %12 : vector<1x1x16xf32> to vector<1x16xf32>
    %14 = vector.shape_cast %11 : vector<1x16xf32> to vector<1x1x16xf32>
    tpu.vector_store %arg5[%c0_8, %c0_9, %c0_10], %14 {strides = array<i32>} : memref<1x2x16xf32, #tpu.memory_space<vmem>>, vector<1x1x16xf32>,
    %15 = arith.mulf %7, %7 : vector<32x16xf32>
    %cst_11 = arith.constant dense<0.000000e+00> : vector<16xf32>
    %16 = vector.multi_reduction <add>, %15, %cst_11 [0] : vector<32x16xf32> to vector<16xf32>
    %17 = vector.shape_cast %16 : vector<16xf32> to vector<1x16xf32>
    %c0_12 = arith.constant 0 : index
    %c1 = arith.constant 1 : index
    %c0_13 = arith.constant 0 : index
    %18 = vector.load %arg5[%c0_12, %c1, %c0_13] : memref<1x2x16xf32, #tpu.memory_space<vmem>>, vector<1x1x16xf32>
    %19 = vector.shape_cast %18 : vector<1x1x16xf32> to vector<1x16xf32>
    %20 = vector.shape_cast %17 : vector<1x16xf32> to vector<1x1x16xf32>
    tpu.vector_store %arg5[%c0_12, %c1, %c0_13], %20 {strides = array<i32>} : memref<1x2x16xf32, #tpu.memory_space<vmem>>, vector<1x1x16xf32>,
    return
  }
  func.func @transform_0(%arg0: i32) -> (i32, i32) {
    %c0_i32 = arith.constant 0 : i32
    %c0_i32_0 = arith.constant 0 : i32
    return %arg0, %c0_i32 : i32, i32
  }
  func.func @transform_1(%arg0: i32) -> (i32, i32) {
    %c0_i32 = arith.constant 0 : i32
    %c0_i32_0 = arith.constant 0 : i32
    %c0_i32_1 = arith.constant 0 : i32
    return %c0_i32, %c0_i32_0 : i32, i32
  }
  func.func @transform_2(%arg0: i32) -> (i32, i32) {
    %c0_i32 = arith.constant 0 : i32
    %c0_i32_0 = arith.constant 0 : i32
    return %arg0, %c0_i32 : i32, i32
  }
  func.func @transform_3(%arg0: i32) -> (i32, i32) {
    %c0_i32 = arith.constant 0 : i32
    %c0_i32_0 = arith.constant 0 : i32
    return %arg0, %c0_i32 : i32, i32
  }
  func.func @transform_4(%arg0: i32) -> (i32, i32, i32) {
    %c0_i32 = arith.constant 0 : i32
    %c0_i32_0 = arith.constant 0 : i32
    %c0_i32_1 = arith.constant 0 : i32
    return %arg0, %c0_i32, %c0_i32_0 : i32, i32, i32
  }
}

module attributes {stable_mosaic.version = 11 : i64} {
  func.func @_head_kernel(%arg0: i32, %arg1: memref<32x32xi8, #tpu.memory_space<vmem>>, %arg2: memref<32x16xbf16, #tpu.memory_space<vmem>>, %arg3: memref<32x1xf32, #tpu.memory_space<vmem>>, %arg4: memref<16x128xbf16, #tpu.memory_space<vmem>>, %arg5: memref<1x128xf32, #tpu.memory_space<vmem>>, %arg6: memref<32x128xf32, #tpu.memory_space<vmem>>) attributes {dimension_semantics = [#tpu.dimension_semantics<parallel>], iteration_bounds = array<i64: 1>, scalar_prefetch = 0 : i64, scratch_operands = 0 : i64, tpu.core_type = #tpu.core_type<tc>, window_params = [{transform_indices = @transform_0, window_bounds = array<i64: 32, 32>}, {pipeline_mode = #tpu.pipeline_mode<synchronous>, transform_indices = @transform_1, window_bounds = array<i64: 32, 16>}, {transform_indices = @transform_2, window_bounds = array<i64: 32, 1>}, {pipeline_mode = #tpu.pipeline_mode<synchronous>, transform_indices = @transform_3, window_bounds = array<i64: 16, 128>}, {pipeline_mode = #tpu.pipeline_mode<synchronous>, transform_indices = @transform_4, window_bounds = array<i64: 1, 128>}, {transform_indices = @transform_5, window_bounds = array<i64: 32, 128>}]} {
    %c0 = arith.constant 0 : index
    %c0_0 = arith.constant 0 : index
    %0 = vector.load %arg1[%c0, %c0_0] : memref<32x32xi8, #tpu.memory_space<vmem>>, vector<32x32xi8>
    %1 = arith.sitofp %0 : vector<32x32xi8> to vector<32x32xf32>
    %2 = arith.truncf %1 : vector<32x32xf32> to vector<32x32xbf16>
    %c0_1 = arith.constant 0 : index
    %c0_2 = arith.constant 0 : index
    %3 = vector.load %arg2[%c0_1, %c0_2] : memref<32x16xbf16, #tpu.memory_space<vmem>>, vector<32x16xbf16>
    %cst = arith.constant dense<0.000000e+00> : vector<32x16xf32>
    %4 = tpu.matmul %2, %3, %cst {dimension_numbers = #tpu.dot_dimension_numbers<[1], [0], [0], [1], [0, 0, 1, 1], [], []>} : vector<32x32xbf16>, vector<32x16xbf16>, vector<32x16xf32> -> vector<32x16xf32>
    %c0_3 = arith.constant 0 : index
    %c0_4 = arith.constant 0 : index
    %5 = vector.load %arg3[%c0_3, %c0_4] : memref<32x1xf32, #tpu.memory_space<vmem>>, vector<32x1xf32>
    %6 = vector.broadcast %5 : vector<32x1xf32> to vector<32x16xf32>
    %7 = arith.mulf %4, %6 : vector<32x16xf32>
    %8 = arith.truncf %7 : vector<32x16xf32> to vector<32x16xbf16>
    %c0_5 = arith.constant 0 : index
    %c0_6 = arith.constant 0 : index
    %9 = vector.load %arg4[%c0_5, %c0_6] : memref<16x128xbf16, #tpu.memory_space<vmem>>, vector<16x128xbf16>
    %cst_7 = arith.constant dense<0.000000e+00> : vector<32x128xf32>
    %10 = tpu.matmul %8, %9, %cst_7 {dimension_numbers = #tpu.dot_dimension_numbers<[1], [0], [0], [1], [0, 0, 1, 1], [], []>} : vector<32x16xbf16>, vector<16x128xbf16>, vector<32x128xf32> -> vector<32x128xf32>
    %c0_8 = arith.constant 0 : index
    %c0_9 = arith.constant 0 : index
    %11 = vector.load %arg5[%c0_8, %c0_9] : memref<1x128xf32, #tpu.memory_space<vmem>>, vector<1x128xf32>
    %12 = vector.broadcast %11 : vector<1x128xf32> to vector<32x128xf32>
    %13 = arith.addf %10, %12 : vector<32x128xf32>
    %c0_10 = arith.constant 0 : index
    %c0_11 = arith.constant 0 : index
    %14 = vector.load %arg6[%c0_10, %c0_11] : memref<32x128xf32, #tpu.memory_space<vmem>>, vector<32x128xf32>
    tpu.vector_store %arg6[%c0_10, %c0_11], %13 {strides = array<i32>} : memref<32x128xf32, #tpu.memory_space<vmem>>, vector<32x128xf32>,
    return
  }
  func.func @transform_0(%arg0: i32) -> (i32, i32) {
    %c0_i32 = arith.constant 0 : i32
    %c0_i32_0 = arith.constant 0 : i32
    return %arg0, %c0_i32 : i32, i32
  }
  func.func @transform_1(%arg0: i32) -> (i32, i32) {
    %c0_i32 = arith.constant 0 : i32
    %c0_i32_0 = arith.constant 0 : i32
    %c0_i32_1 = arith.constant 0 : i32
    return %c0_i32, %c0_i32_0 : i32, i32
  }
  func.func @transform_2(%arg0: i32) -> (i32, i32) {
    %c0_i32 = arith.constant 0 : i32
    %c0_i32_0 = arith.constant 0 : i32
    return %arg0, %c0_i32 : i32, i32
  }
  func.func @transform_3(%arg0: i32) -> (i32, i32) {
    %c0_i32 = arith.constant 0 : i32
    %c0_i32_0 = arith.constant 0 : i32
    %c0_i32_1 = arith.constant 0 : i32
    return %c0_i32, %c0_i32_0 : i32, i32
  }
  func.func @transform_4(%arg0: i32) -> (i32, i32) {
    %c0_i32 = arith.constant 0 : i32
    %c0_i32_0 = arith.constant 0 : i32
    %c0_i32_1 = arith.constant 0 : i32
    return %c0_i32, %c0_i32_0 : i32, i32
  }
  func.func @transform_5(%arg0: i32) -> (i32, i32) {
    %c0_i32 = arith.constant 0 : i32
    %c0_i32_0 = arith.constant 0 : i32
    return %arg0, %c0_i32 : i32, i32
  }
}

</mosaic_0001>

<bundles_post_ra>
// kernel: vgcn_encoder2.4
= control target key start
LH: loop header
LB: loop body
LE: loop exit
PB: predicated region body
PF: predicated region fallthrough
CT: control target
= control target key end

     0   :  { %v229_v1 = vmov 0   ;;  %vm51_vm0 = vcmask 261120   ;;  %vm151_vm1 = vcmask 125952   ;;  %vm156_vm2 = vcmask 130048   ;;  %s315_s1 = inlined_call_operand.vmem [shape: bf16[32,16], index: 1, kind: input, shape index: {}]   ;;  %s316_s0 = inlined_call_operand.vmem [shape: s8[32,32], index: 0, kind: input, shape index: {}]   ;;  %s317_s2 = inlined_call_operand.vmem [shape: f32[32,1], index: 2, kind: input, shape index: {}]   ;;  %s318_s3 = inlined_call_operand.vmem [shape: bf16[32,16], index: 3, kind: output, shape index: {0}]   ;;  %s319_s4 = inlined_call_operand.vmem [shape: f32[1,2,16], index: 4, kind: output, shape index: {1}]  }
   0x1   :  { %v227_v0 = vld [vmem:[%s315_s1] sm:$0xff]   ;;  %225 = vset.pattern.permute.xlu0 %v229_v1  ;;  %226 = vset.pattern.permute.xlu1 %v229_v1  ;;  %v228_v2 = vld [vmem:[%s315_s1 + $0x8] sm:$0xff]   ;;  %v109_v11 = vld [vmem:[%s317_s2 + $0x10] sm:$0xff]  ;;  %vm170_vm3 = vcmask 122880  }
   0x2   :  { %216 = vmatprep.subr.bf16.mxu0 %v227_v0  ;;  %v17_v3 = vld [vmem:[%s316_s0] sm:$0x3]  ;;  %v18_v4 = vld [vmem:[%s316_s0 + $0x2] sm:$0x3]  ;;  %v19_v5 = vld [vmem:[%s316_s0 + $0x4] sm:$0x3]  ;;  %123 = vperm.xlu1 %226, %v109_v11  }
   0x3   :  { %217 = vmatpush3.bf16.msra.mxu0 %v227_v0  ;;  %v21_v6 = vunpack.c.l.s8.bf16 %v17_v3  ;;  %v22_v7 = vunpack.c.l.s8.bf16 %v18_v4  ;;  %v20_v8 = vld [vmem:[%s316_s0 + $0x6] sm:$0x3]  ;;  %v23_v9 = vunpack.c.l.s8.bf16 %v19_v5  ;;  %v108_v14 = vld [vmem:[%s317_s2 + $0x8] sm:$0xff]  ;;  %v110_v16 = vld [vmem:[%s317_s2 + $0x18] sm:$0xff] }
   0x4   :  { %v107_v10 = vld [vmem:[%s317_s2] sm:$0xff]  ;;  %218 = vmatprep.subr.bf16.mxu0 %v228_v2  ;;  %v24_v12 = vunpack.c.l.s8.bf16 %v20_v8 }
   0x5   :  { %113 = vperm.xlu0 %225, %v107_v10   ;;  %v198_v13 = vcombine.low %v21_v6, %v22_v7 }
   0x6   :  { %v199_v15 = vcombine.low %v23_v9, %v24_v12  ;;  %128 = vperm.xlu1 %226, %v110_v16  }
   0x7   :  { %219 = vmatpush3.bf16.msra.mxu0 %v228_v2  ;;  %220 = vmatprep.mubr.msk.bf16.mxu0 %vm51_vm0, %v198_v13 }
   0x9   :  { %118 = vperm.xlu0 %225, %v108_v14  }
   0xa   :  { %221 = vmatmul.mubr.msk.bf16.vlgmr.msra.gmra.mrb[0].mxu0 %vm51_vm0, %v199_v15 }
  0x81   :  { %v124_v17 = vpop.permute.xlu1 %123 }
  0x84   :  { %v114_v18 = vpop.permute.xlu0 %113 }
  0x85   :  { %v129_v20 = vpop.permute.xlu1 %128 }
  0x88   :  { %v119_v25 = vpop.permute.xlu0 %118 }
  0xdd   :  { %v222_v19 = vpop.f32.mrb[0].mxu0 }
  0xde   :  { %v133_v21 = vmul.f32 %v222_v19, %v124_v17  ;;  %v92_v22 = vpop.f32.mrb[1].mxu0 }
  0xdf   :  { %v131_v23 = vmul.f32 %v114_v18, %v92_v22  ;;  %v223_v24 = vpop.f32.mrb[2].mxu0 }
  0xe0   :  { %v210_v26 = vpack.c.bf16 %v133_v21, %v133_v21  ;;  %v134_v27 = vmul.f32 %v223_v24, %v129_v20  ;;  %v95_v28 = vpop.f32.mrb[3].mxu0  ;;  %v174_v32 = vmul.f32 %v133_v21, %v133_v21  ;;  %v160_v39 = vsel %vm156_vm2, %v133_v21, 0.0 }
  0xe1   :  { %v208_v29 = vpack.c.bf16 %v131_v23, %v131_v23  ;;  %v172_v30 = vmul.f32 %v131_v23, %v131_v23  ;;  %v132_v31 = vmul.f32 %v119_v25, %v95_v28  ;;  %v157_v34 = vsel %vm156_vm2, %v131_v23, 0.0 }
  0xe2   :  { %154 = vst.msk [vmem:[%s318_s3 + $0x8] sm:$0xf] %vm151_vm1, %v210_v26  ;;  %v211_v33 = vpack.c.bf16 %v134_v27, %v134_v27  ;;  %v175_v41 = vmul.f32 %v134_v27, %v134_v27  ;;  %v179_v45 = vsel %vm156_vm2, %v174_v32, 0.0  ;;  %v162_v46 = vsel %vm156_vm2, %v134_v27, 0.0 }
  0xe3   :  { %152 = vst.msk [vmem:[%s318_s3] sm:$0xf] %vm151_vm1, %v208_v29  ;;  %v209_v35 = vpack.c.bf16 %v132_v31, %v132_v31  ;;  %v158_v36 = vsel %vm156_vm2, %v132_v31, 0.0  ;;  %v173_v37 = vmul.f32 %v132_v31, %v132_v31  ;;  %v176_v40 = vsel %vm156_vm2, %v172_v30, 0.0 }
  0xe4   :  { %155 = vst.msk [vmem:[%s318_s3 + $0xc] sm:$0xf] %vm151_vm1, %v211_v33  ;;  %v159_v38 = vadd.f32 %v158_v36, %v157_v34  ;;  %v181_v49 = vsel %vm156_vm2, %v175_v41, 0.0 }
  0xe5   :  { %153 = vst.msk [vmem:[%s318_s3 + $0x4] sm:$0xf] %vm151_vm1, %v209_v35  ;;  %v177_v42 = vsel %vm156_vm2, %v173_v37, 0.0 }
  0xe6   :  { %v161_v43 = vadd.f32 %v160_v39, %v159_v38  ;;  %v178_v44 = vadd.f32 %v177_v42, %v176_v40 }
  0xe8   :  { %v163_v47 = vadd.f32 %v162_v46, %v161_v43  ;;  %v180_v48 = vadd.f32 %v179_v45, %v178_v44 }
  0xea   :  { %v164_v50 = vrot.slane %v163_v47, 4  ;;  %v182_v51 = vadd.f32 %v181_v49, %v180_v48 }
  0xec   :  { %v165_v52 = vadd.f32 %v164_v50, %v163_v47  ;;  %v183_v53 = vrot.slane %v182_v51, 4 }
  0xee   :  { %v166_v54 = vrot.slane %v165_v52, 2  ;;  %v184_v55 = vadd.f32 %v183_v53, %v182_v51 }
  0xf0   :  { %v167_v56 = vadd.f32 %v166_v54, %v165_v52  ;;  %v185_v57 = vrot.slane %v184_v55, 2 }
  0xf2   :  { %v168_v58 = vrot.slane %v167_v56, 1  ;;  %v186_v59 = vadd.f32 %v185_v57, %v184_v55 }
  0xf4   :  { %v169_v60 = vadd.f32 %v168_v58, %v167_v56  ;;  %v187_v61 = vrot.slane %v186_v59, 1 }
  0xf6   :  { %171 = vst.msk [vmem:[%s319_s4] sm:$0x1] %vm170_vm3, %v169_v60  ;;  %v188_v62 = vadd.f32 %v187_v61, %v186_v59 }
  0xf8   :  { %189 = vst.msk [vmem:[%s319_s4 + $0x1] sm:$0x1] %vm170_vm3, %v188_v62 }

// kernel: vgcn_encoder2.3
= control target key start
LH: loop header
LB: loop body
LE: loop exit
PB: predicated region body
PF: predicated region fallthrough
CT: control target
= control target key end

     0   :  { %vm34_vm0 = vcmask 1043456   ;;  %vm27_vm1 = vcmask 64512   ;;  %vm103_vm2 = vcmask 125952   ;;  %s172_s1 = inlined_call_operand.vmem [shape: bf16[8,16], index: 1, kind: input, shape index: {}]   ;;  %s173_s0 = inlined_call_operand.vmem [shape: bf16[32,8], index: 0, kind: input, shape index: {}]   ;;  %s174_s2 = inlined_call_operand.vmem [shape: bf16[32,16], index: 2, kind: output, shape index: {}]  }
   0x1   :  { %v16_v0 = vld [vmem:[%s172_s1] sm:$0xf]  ;;  %v135_v3 = vld [vmem:[%s173_s0 + $0x8] sm:$0xff]  }
   0x2   :  { %133 = vmatprep.subr.msk.bf16.mxu0 %vm34_vm0, %v16_v0  ;;  %v36_v1 = vsel %vm34_vm0, %v16_v0, 0  ;;  %v134_v2 = vld [vmem:[%s173_s0] sm:$0xff]  }
   0x3   :  { %128 = vmatpush3.bf16.msra.mxu0 %v36_v1  ;;  %129 = vmatprep.mubr.msk.bf16.mxu0 %vm27_vm1, %v134_v2 }
   0x6   :  { %130 = vmatmul.mubr.msk.bf16.vlgmr.msra.gmra.mrb[0].mxu0 %vm27_vm1, %v135_v3 }
  0xd9   :  { %v131_v4 = vpop.f32.mrb[0].mxu0 }
  0xda   :  { %v122_v5 = vpack.c.bf16 %v131_v4, %v131_v4  ;;  %v72_v6 = vpop.f32.mrb[1].mxu0 }
  0xdb   :  { %v120_v7 = vpack.c.bf16 %v72_v6, %v72_v6  ;;  %v132_v8 = vpop.f32.mrb[2].mxu0 }
  0xdc   :  { %106 = vst.msk [vmem:[%s174_s2 + $0x8] sm:$0xf] %vm103_vm2, %v122_v5  ;;  %v123_v9 = vpack.c.bf16 %v132_v8, %v132_v8  ;;  %v75_v10 = vpop.f32.mrb[3].mxu0 }
  0xdd   :  { %104 = vst.msk [vmem:[%s174_s2] sm:$0xf] %vm103_vm2, %v120_v7  ;;  %v121_v11 = vpack.c.bf16 %v75_v10, %v75_v10 }
  0xde   :  { %107 = vst.msk [vmem:[%s174_s2 + $0xc] sm:$0xf] %vm103_vm2, %v123_v9 }
  0xdf   :  { %105 = vst.msk [vmem:[%s174_s2 + $0x4] sm:$0xf] %vm103_vm2, %v121_v11 }

// kernel: vgcn_encoder2.5
= control target key start
LH: loop header
LB: loop body
LE: loop exit
PB: predicated region body
PF: predicated region fallthrough
CT: control target
= control target key end

     0   :  { %v257_v1 = vmov 0   ;;  %vm55_vm0 = vcmask 261120   ;;  %vm156_vm1 = vcmask 130048   ;;  %s336_s1 = inlined_call_operand.vmem [shape: bf16[32,16], index: 1, kind: input, shape index: {}]   ;;  %s337_s0 = inlined_call_operand.vmem [shape: s8[32,32], index: 0, kind: input, shape index: {}]   ;;  %s338_s2 = inlined_call_operand.vmem [shape: f32[32,1], index: 2, kind: input, shape index: {}]   ;;  %s339_s3 = inlined_call_operand.vmem [shape: bf16[16,128], index: 3, kind: input, shape index: {}]   ;;  %s340_s4 = inlined_call_operand.vmem [shape: f32[1,128], index: 4, kind: input, shape index: {}]   ;;  %s341_s5 = inlined_call_operand.vmem [shape: f32[32,128], index: 5, kind: output, shape index: {}]  }
   0x1   :  { %v254_v0 = vld [vmem:[%s336_s1] sm:$0xff]   ;;  %252 = vset.pattern.permute.xlu0 %v257_v1  ;;  %253 = vset.pattern.permute.xlu1 %v257_v1  ;;  %v255_v2 = vld [vmem:[%s336_s1 + $0x8] sm:$0xff]   ;;  %v113_v11 = vld [vmem:[%s338_s2 + $0x10] sm:$0xff] }
   0x2   :  { %237 = vmatprep.subr.bf16.mxu0 %v254_v0  ;;  %v21_v3 = vld [vmem:[%s337_s0] sm:$0x3]  ;;  %v22_v4 = vld [vmem:[%s337_s0 + $0x2] sm:$0x3]  ;;  %v23_v5 = vld [vmem:[%s337_s0 + $0x4] sm:$0x3]  ;;  %127 = vperm.xlu1 %253, %v113_v11  }
   0x3   :  { %238 = vmatpush3.bf16.msra.mxu0 %v254_v0  ;;  %v25_v6 = vunpack.c.l.s8.bf16 %v21_v3  ;;  %v26_v7 = vunpack.c.l.s8.bf16 %v22_v4  ;;  %v24_v8 = vld [vmem:[%s337_s0 + $0x6] sm:$0x3]  ;;  %v27_v9 = vunpack.c.l.s8.bf16 %v23_v5  ;;  %v112_v14 = vld [vmem:[%s338_s2 + $0x8] sm:$0xff]  ;;  %v114_v16 = vld [vmem:[%s338_s2 + $0x18] sm:$0xff] }
   0x4   :  { %v111_v10 = vld [vmem:[%s338_s2] sm:$0xff]  ;;  %239 = vmatprep.subr.bf16.mxu0 %v255_v2  ;;  %v28_v12 = vunpack.c.l.s8.bf16 %v24_v8 }
   0x5   :  { %117 = vperm.xlu0 %252, %v111_v10   ;;  %v220_v13 = vcombine.low %v25_v6, %v26_v7  ;;  %v256_v17 = vld [vmem:[%s339_s3] sm:$0xff]  }
   0x6   :  { %v221_v15 = vcombine.low %v27_v9, %v28_v12  ;;  %132 = vperm.xlu1 %253, %v114_v16   ;;  %245 = vmatprep.subr.bf16.mxu1 %v256_v17  ;;  %v226_v32 = vld [vmem:[%s340_s4] ss:$0 sm:$0xff] }
   0x7   :  { %240 = vmatpush3.bf16.msra.mxu0 %v255_v2  ;;  %241 = vmatprep.mubr.msk.bf16.mxu0 %vm55_vm0, %v220_v13 }
   0x8   :  { %246 = vmatpush3.bf16.msra.mxu1 %v256_v17 }
   0x9   :  { %122 = vperm.xlu0 %252, %v112_v14  }
   0xa   :  { %242 = vmatmul.mubr.msk.bf16.vlgmr.msra.gmra.mrb[0].mxu0 %vm55_vm0, %v221_v15 }
  0x81   :  { %v128_v18 = vpop.permute.xlu1 %127 }
  0x84   :  { %v118_v19 = vpop.permute.xlu0 %117 }
  0x85   :  { %v133_v22 = vpop.permute.xlu1 %132 }
  0x88   :  { %v123_v24 = vpop.permute.xlu0 %122 }
  0xdd   :  { %v243_v20 = vpop.f32.mrb[0].mxu0 }
  0xde   :  { %v96_v21 = vpop.f32.mrb[1].mxu0  ;;  %v137_v25 = vmul.f32 %v243_v20, %v128_v18 }
  0xdf   :  { %v244_v23 = vpop.f32.mrb[2].mxu0  ;;  %v135_v28 = vmul.f32 %v118_v19, %v96_v21 }
  0xe0   :  { %v138_v26 = vmul.f32 %v244_v23, %v133_v22  ;;  %v99_v27 = vpop.f32.mrb[3].mxu0 }
  0xe1   :  { %v136_v29 = vmul.f32 %v123_v24, %v99_v27 }
  0xe2   :  { %v140_v30 = vpack.c.bf16 %v138_v26, %v137_v25 }
  0xe3   :  { %v139_v31 = vpack.c.bf16 %v136_v29, %v135_v28 }
  0xe5   :  { %247 = vmatprep.mubr.msk.bf16.mxu1 %vm156_vm1, %v139_v31 }
  0xe6   :  { %248 = vmatmul.mubr.msk.bf16.vlgmr.msra.gmra.mrb[0].mxu1 %vm156_vm1, %v140_v30 }
 0x1b9   :  { %v249_v33 = vpop.f32.mrb[0].mxu1 }
 0x1ba   :  { %v206_v34 = vadd.f32 %v249_v33, %v226_v32  ;;  %v197_v35 = vpop.f32.mrb[1].mxu1 }
 0x1bb   :  { %v198_v36 = vadd.f32 %v226_v32, %v197_v35  ;;  %v250_v37 = vpop.f32.mrb[2].mxu1 }
 0x1bc   :  { %214 = vst [vmem:[%s341_s5 + $0x10] sm:$0xff] %v206_v34  ;;  %v209_v38 = vadd.f32 %v250_v37, %v226_v32  ;;  %v200_v39 = vpop.f32.mrb[3].mxu1 }
 0x1bd   :  { %212 = vst [vmem:[%s341_s5] sm:$0xff] %v198_v36  ;;  %v201_v40 = vadd.f32 %v226_v32, %v200_v39 }
 0x1be   :  { %215 = vst [vmem:[%s341_s5 + $0x18] sm:$0xff] %v209_v38 }
 0x1bf   :  { %213 = vst [vmem:[%s341_s5 + $0x8] sm:$0xff] %v201_v40 }

</bundles_post_ra>
